<compile_context>
chip_gen: v5e
topology: v5e:2x2
jax: 0.10.0
libtpu: 0.0.40
codegen_flags: <defaults>
</compile_context>

<pallas_src>
import math

import jax
import jax.numpy as jnp
from jax.experimental import pallas as pl
from jax.experimental.pallas import tpu as pltpu


def _round_up(n, m):
    return ((n + m - 1) // m) * m


def mlp3_kernel(x_ref, w0_ref, b0_ref, w1_ref, b1_ref, w2_ref, b2_ref, o_ref):
    """One batch tile: (TB, obs) -> ReLU(TB,128) -> ReLU(TB,128) -> (TB, A_pad)."""
    x = x_ref[...]
    h = jnp.dot(x, w0_ref[...], preferred_element_type=jnp.float32) + b0_ref[...]
    h = jnp.maximum(h, 0.0)
    h = jnp.dot(h, w1_ref[...], preferred_element_type=jnp.float32) + b1_ref[...]
    h = jnp.maximum(h, 0.0)
    o_ref[...] = jnp.dot(h, w2_ref[...], preferred_element_type=jnp.float32) + b2_ref[...]


def noisy_dqn_forward(x, params, training=True, batch_tile=1024):
    """Fused forward pass of NoisyDQN. `params` is the dict from init_params."""
    assert batch_tile % 8 == 0
    batch, obs = x.shape
    hid = params["w0"].shape[1]
    action_space = params["w2_mu"].shape[1]

    # ---- hoist noisy-weight composition out of the per-tile hot path ----
    if training:
        w1 = params["w1_mu"] + params["w1_sigma"] * params["w1_eps"]
        b1 = params["b1_mu"] + params["b1_sigma"] * params["b1_eps"]
        w2 = params["w2_mu"] + params["w2_sigma"] * params["w2_eps"]
        b2 = params["b2_mu"] + params["b2_sigma"] * params["b2_eps"]
    else:
        # eval: weight = mu, bias = mu (no zero-eps traffic, no dead FMAs)
        w1, b1 = params["w1_mu"], params["b1_mu"]
        w2, b2 = params["w2_mu"], params["b2_mu"]

    # ---- lane-dense output: pad final out dim up to a multiple of 128 ----
    a_pad = _round_up(action_space, 128)
    if a_pad != action_space:
        w2 = jnp.pad(w2, ((0, 0), (0, a_pad - action_space)))
        b2 = jnp.pad(b2, ((0, 0), (0, a_pad - action_space)))

    # ---- batch tiling (block == full dims is legal for a single small tile) ----
    tb = batch if batch <= batch_tile else batch_tile
    grid = (pl.cdiv(batch, tb),)

    act_spec = pl.BlockSpec((tb, obs), lambda i: (i, 0))
    out_spec = pl.BlockSpec((tb, a_pad), lambda i: (i, 0))

    def resident(shape):
        return pl.BlockSpec(shape, lambda i: (0, 0))

    flops = 2 * batch * (obs * hid + hid * hid + hid * a_pad)
    bytes_accessed = 4 * (batch * obs + batch * a_pad
                          + obs * hid + hid
                          + hid * hid + hid
                          + hid * a_pad + a_pad)
    cost = pl.CostEstimate(flops=flops, transcendentals=0,
                           bytes_accessed=bytes_accessed)

    out = pl.pallas_call(
        mlp3_kernel,
        out_shape=jax.ShapeDtypeStruct((batch, a_pad), jnp.float32),
        grid=grid,
        in_specs=[
            act_spec,
            resident((obs, hid)), resident((1, hid)),
            resident((hid, hid)), resident((1, hid)),
            resident((hid, a_pad)), resident((1, a_pad)),
        ],
        out_specs=out_spec,
        compiler_params=pltpu.CompilerParams(
            dimension_semantics=("parallel",)),
        cost_estimate=cost,
    )(x, params["w0"], params["b0"], w1, b1, w2, b2)

    return out[:, :action_space]


def _scale_noise(key, size):
    # x = randn(size); x = sign(x) * sqrt(|x|)   (factorized Gaussian noise)
    x = jax.random.normal(key, (size,), dtype=jnp.float32)
    return jnp.sign(x) * jnp.sqrt(jnp.abs(x))


def init_params(key, observation_space, action_space, std_init=0.4):
    """Parameter init mirroring NoisyDQN.__init__ shapes.

    Weight matrices are stored transposed, shape (in, out); biases as (1, out).
    """
    keys = jax.random.split(key, 14)

    # nn.Linear(observation_space, 128): uniform(-1/sqrt(in), 1/sqrt(in))
    r0 = 1.0 / math.sqrt(observation_space)
    w0 = jax.random.uniform(keys[0], (observation_space, 128), jnp.float32, -r0, r0)
    b0 = jax.random.uniform(keys[1], (1, 128), jnp.float32, -r0, r0)

    # NoisyLinear(128, 128)
    r1 = 1.0 / math.sqrt(128)
    s1 = std_init / math.sqrt(128)
    w1_mu = jax.random.uniform(keys[2], (128, 128), jnp.float32, -r1, r1)
    w1_sigma = jnp.full((128, 128), s1, jnp.float32)
    b1_mu = jax.random.uniform(keys[3], (1, 128), jnp.float32, -r1, r1)
    b1_sigma = jnp.full((1, 128), s1, jnp.float32)
    eps_in1 = _scale_noise(keys[4], 128)
    eps_out1 = _scale_noise(keys[5], 128)
    # torch stores eps as (out, in); transposed here -> (in, out) = outer(eps_in, eps_out)
    w1_eps = jnp.outer(eps_in1, eps_out1)
    b1_eps = _scale_noise(keys[6], 128).reshape(1, 128)

    # NoisyLinear(128, action_space)
    s2 = std_init / math.sqrt(action_space)
    w2_mu = jax.random.uniform(keys[7], (128, action_space), jnp.float32, -r1, r1)
    w2_sigma = jnp.full((128, action_space), s2, jnp.float32)
    b2_mu = jax.random.uniform(keys[8], (1, action_space), jnp.float32, -r1, r1)
    b2_sigma = jnp.full((1, action_space), s2, jnp.float32)
    eps_in2 = _scale_noise(keys[9], 128)          # fresh input-noise for layer 2
    eps_out2 = _scale_noise(keys[10], action_space)
    w2_eps = jnp.outer(eps_in2, eps_out2)
    b2_eps = _scale_noise(keys[11], action_space).reshape(1, action_space)

    return {
        "w0": w0, "b0": b0,
        "w1_mu": w1_mu, "w1_sigma": w1_sigma, "w1_eps": w1_eps,
        "b1_mu": b1_mu, "b1_sigma": b1_sigma, "b1_eps": b1_eps,
        "w2_mu": w2_mu, "w2_sigma": w2_sigma, "w2_eps": w2_eps,
        "b2_mu": b2_mu, "b2_sigma": b2_sigma, "b2_eps": b2_eps,
    }


def reference_forward(x, params, training=True):
    """Pure-JAX reference of the PyTorch forward (for sanity checking)."""
    h = jnp.maximum(x @ params["w0"] + params["b0"], 0.0)
    if training:
        w1 = params["w1_mu"] + params["w1_sigma"] * params["w1_eps"]
        b1 = params["b1_mu"] + params["b1_sigma"] * params["b1_eps"]
        w2 = params["w2_mu"] + params["w2_sigma"] * params["w2_eps"]
        b2 = params["b2_mu"] + params["b2_sigma"] * params["b2_eps"]
    else:
        w1, b1 = params["w1_mu"], params["b1_mu"]
        w2, b2 = params["w2_mu"], params["b2_mu"]
    h = jnp.maximum(h @ w1 + b1, 0.0)
    return h @ w2 + b2


if __name__ == "__main__":
    observation_space = 8
    action_space = 4

    key = jax.random.PRNGKey(0)
    k_x, k_p, k_x2 = jax.random.split(key, 3)
    params = init_params(k_p, observation_space, action_space)

    # small single-tile case (batch=2), training mode
    x = jax.random.normal(k_x, (2, observation_space), dtype=jnp.float32)
    out = jax.block_until_ready(noisy_dqn_forward(x, params, training=True))
    ref = reference_forward(x, params, training=True)
    assert out.shape == (2, action_space)
    assert jnp.allclose(out, ref, atol=1e-4, rtol=1e-4)

    # multi-tile pipelined case (grid over batch, partial last tile)
    xb = jax.random.normal(k_x2, (300, observation_space), dtype=jnp.float32)
    outb = jax.block_until_ready(
        noisy_dqn_forward(xb, params, training=True, batch_tile=128))
    refb = reference_forward(xb, params, training=True)
    assert outb.shape == (300, action_space)
    assert jnp.allclose(outb, refb, atol=1e-4, rtol=1e-4)

    # eval mode (mu-only path, no eps tensors)
    oute = jax.block_until_ready(
        noisy_dqn_forward(xb, params, training=False, batch_tile=128))
    refe = reference_forward(xb, params, training=False)
    assert jnp.allclose(oute, refe, atol=1e-4, rtol=1e-4)

    print("KERNEL_OK")
</pallas_src>

<mosaic_0001>
module attributes {stable_mosaic.version = 11 : i64} {
  func.func @mlp3_kernel(%arg0: i32, %arg1: memref<2x8xf32, #tpu.memory_space<vmem>>, %arg2: memref<8x128xf32, #tpu.memory_space<vmem>>, %arg3: memref<1x128xf32, #tpu.memory_space<vmem>>, %arg4: memref<128x128xf32, #tpu.memory_space<vmem>>, %arg5: memref<1x128xf32, #tpu.memory_space<vmem>>, %arg6: memref<128x128xf32, #tpu.memory_space<vmem>>, %arg7: memref<1x128xf32, #tpu.memory_space<vmem>>, %arg8: memref<2x128xf32, #tpu.memory_space<vmem>>) attributes {dimension_semantics = [#tpu.dimension_semantics<parallel>], iteration_bounds = array<i64: 1>, scalar_prefetch = 0 : i64, scratch_operands = 0 : i64, tpu.core_type = #tpu.core_type<tc>, window_params = [{transform_indices = @transform_0, window_bounds = array<i64: 2, 8>}, {pipeline_mode = #tpu.pipeline_mode<synchronous>, transform_indices = @transform_1, window_bounds = array<i64: 8, 128>}, {pipeline_mode = #tpu.pipeline_mode<synchronous>, transform_indices = @transform_2, window_bounds = array<i64: 1, 128>}, {pipeline_mode = #tpu.pipeline_mode<synchronous>, transform_indices = @transform_3, window_bounds = array<i64: 128, 128>}, {pipeline_mode = #tpu.pipeline_mode<synchronous>, transform_indices = @transform_4, window_bounds = array<i64: 1, 128>}, {pipeline_mode = #tpu.pipeline_mode<synchronous>, transform_indices = @transform_5, window_bounds = array<i64: 128, 128>}, {pipeline_mode = #tpu.pipeline_mode<synchronous>, transform_indices = @transform_6, window_bounds = array<i64: 1, 128>}, {transform_indices = @transform_7, window_bounds = array<i64: 2, 128>}]} {
    %c0 = arith.constant 0 : index
    %c0_0 = arith.constant 0 : index
    %0 = vector.load %arg1[%c0, %c0_0] : memref<2x8xf32, #tpu.memory_space<vmem>>, vector<2x8xf32>
    %c0_1 = arith.constant 0 : index
    %c0_2 = arith.constant 0 : index
    %1 = vector.load %arg2[%c0_1, %c0_2] : memref<8x128xf32, #tpu.memory_space<vmem>>, vector<8x128xf32>
    %cst = arith.constant dense<0.000000e+00> : vector<2x128xf32>
    %2 = tpu.matmul %0, %1, %cst {dimension_numbers = #tpu.dot_dimension_numbers<[1], [0], [0], [1], [0, 0, 1, 1], [], []>} : vector<2x8xf32>, vector<8x128xf32>, vector<2x128xf32> -> vector<2x128xf32>
    %c0_3 = arith.constant 0 : index
    %c0_4 = arith.constant 0 : index
    %3 = vector.load %arg3[%c0_3, %c0_4] : memref<1x128xf32, #tpu.memory_space<vmem>>, vector<1x128xf32>
    %4 = vector.broadcast %3 : vector<1x128xf32> to vector<2x128xf32>
    %5 = arith.addf %2, %4 : vector<2x128xf32>
    %cst_5 = arith.constant 0.000000e+00 : f32
    %6 = vector.broadcast %cst_5 : f32 to vector<2x128xf32>
    %7 = arith.maximumf %5, %6 : vector<2x128xf32>
    %c0_6 = arith.constant 0 : index
    %c0_7 = arith.constant 0 : index
    %8 = vector.load %arg4[%c0_6, %c0_7] : memref<128x128xf32, #tpu.memory_space<vmem>>, vector<128x128xf32>
    %cst_8 = arith.constant dense<0.000000e+00> : vector<2x128xf32>
    %9 = tpu.matmul %7, %8, %cst_8 {dimension_numbers = #tpu.dot_dimension_numbers<[1], [0], [0], [1], [0, 0, 1, 1], [], []>} : vector<2x128xf32>, vector<128x128xf32>, vector<2x128xf32> -> vector<2x128xf32>
    %c0_9 = arith.constant 0 : index
    %c0_10 = arith.constant 0 : index
    %10 = vector.load %arg5[%c0_9, %c0_10] : memref<1x128xf32, #tpu.memory_space<vmem>>, vector<1x128xf32>
    %11 = vector.broadcast %10 : vector<1x128xf32> to vector<2x128xf32>
    %12 = arith.addf %9, %11 : vector<2x128xf32>
    %cst_11 = arith.constant 0.000000e+00 : f32
    %13 = vector.broadcast %cst_11 : f32 to vector<2x128xf32>
    %14 = arith.maximumf %12, %13 : vector<2x128xf32>
    %c0_12 = arith.constant 0 : index
    %c0_13 = arith.constant 0 : index
    %15 = vector.load %arg6[%c0_12, %c0_13] : memref<128x128xf32, #tpu.memory_space<vmem>>, vector<128x128xf32>
    %cst_14 = arith.constant dense<0.000000e+00> : vector<2x128xf32>
    %16 = tpu.matmul %14, %15, %cst_14 {dimension_numbers = #tpu.dot_dimension_numbers<[1], [0], [0], [1], [0, 0, 1, 1], [], []>} : vector<2x128xf32>, vector<128x128xf32>, vector<2x128xf32> -> vector<2x128xf32>
    %c0_15 = arith.constant 0 : index
    %c0_16 = arith.constant 0 : index
    %17 = vector.load %arg7[%c0_15, %c0_16] : memref<1x128xf32, #tpu.memory_space<vmem>>, vector<1x128xf32>
    %18 = vector.broadcast %17 : vector<1x128xf32> to vector<2x128xf32>
    %19 = arith.addf %16, %18 : vector<2x128xf32>
    %c0_17 = arith.constant 0 : index
    %c0_18 = arith.constant 0 : index
    %20 = vector.load %arg8[%c0_17, %c0_18] : memref<2x128xf32, #tpu.memory_space<vmem>>, vector<2x128xf32>
    tpu.vector_store %arg8[%c0_17, %c0_18], %19 {strides = array<i32>} : memref<2x128xf32, #tpu.memory_space<vmem>>, vector<2x128xf32>,
    return
  }
  func.func @transform_0(%arg0: i32) -> (i32, i32) {
    %c0_i32 = arith.constant 0 : i32
    %c0_i32_0 = arith.constant 0 : i32
    return %arg0, %c0_i32 : i32, i32
  }
  func.func @transform_1(%arg0: i32) -> (i32, i32) {
    %c0_i32 = arith.constant 0 : i32
    %c0_i32_0 = arith.constant 0 : i32
    %c0_i32_1 = arith.constant 0 : i32
    return %c0_i32, %c0_i32_0 : i32, i32
  }
  func.func @transform_2(%arg0: i32) -> (i32, i32) {
    %c0_i32 = arith.constant 0 : i32
    %c0_i32_0 = arith.constant 0 : i32
    %c0_i32_1 = arith.constant 0 : i32
    return %c0_i32, %c0_i32_0 : i32, i32
  }
  func.func @transform_3(%arg0: i32) -> (i32, i32) {
    %c0_i32 = arith.constant 0 : i32
    %c0_i32_0 = arith.constant 0 : i32
    %c0_i32_1 = arith.constant 0 : i32
    return %c0_i32, %c0_i32_0 : i32, i32
  }
  func.func @transform_4(%arg0: i32) -> (i32, i32) {
    %c0_i32 = arith.constant 0 : i32
    %c0_i32_0 = arith.constant 0 : i32
    %c0_i32_1 = arith.constant 0 : i32
    return %c0_i32, %c0_i32_0 : i32, i32
  }
  func.func @transform_5(%arg0: i32) -> (i32, i32) {
    %c0_i32 = arith.constant 0 : i32
    %c0_i32_0 = arith.constant 0 : i32
    %c0_i32_1 = arith.constant 0 : i32
    return %c0_i32, %c0_i32_0 : i32, i32
  }
  func.func @transform_6(%arg0: i32) -> (i32, i32) {
    %c0_i32 = arith.constant 0 : i32
    %c0_i32_0 = arith.constant 0 : i32
    %c0_i32_1 = arith.constant 0 : i32
    return %c0_i32, %c0_i32_0 : i32, i32
  }
  func.func @transform_7(%arg0: i32) -> (i32, i32) {
    %c0_i32 = arith.constant 0 : i32
    %c0_i32_0 = arith.constant 0 : i32
    return %arg0, %c0_i32 : i32, i32
  }
}

</mosaic_0001>

<bundles_post_ra>
// kernel: tpu_custom_call.1
= control target key start
LH: loop header
LB: loop body
LE: loop exit
PB: predicated region body
PF: predicated region fallthrough
CT: control target
= control target key end

     0   :  { %12 = vsyncpa [#allocation3], 0  ;;  %s428_s0 = inlined_call_operand.hbm [shape: f32[2,8], index: 0, kind: input, shape index: {}]   ;;  %s429_s1 = inlined_call_operand.hbm [shape: f32[8,128], index: 1, kind: input, shape index: {}]   ;;  %s430_s2 = inlined_call_operand.vmem [shape: f32[1,128], index: 2, kind: input, shape index: {}]   ;;  %s431_s3 = inlined_call_operand.hbm [shape: f32[128,128], index: 3, kind: input, shape index: {}]   ;;  %s432_s4 = inlined_call_operand.vmem [shape: f32[1,128], index: 4, kind: input, shape index: {}]   ;;  %s433_s5 = inlined_call_operand.hbm [shape: f32[128,128], index: 5, kind: input, shape index: {}]   ;;  %s434_s6 = inlined_call_operand.vmem [shape: f32[1,128], index: 6, kind: input, shape index: {}]   ;;  %s435_s7 = inlined_call_operand.hbm [shape: f32[2,128], index: 7, kind: output, shape index: {}]  }
   0x1   :  { %13 = vsyncpa [#allocation6], 0 }
   0x2   :  { %14 = vsyncpa [#allocation9], 0  ;;  %s32_s26 = sshll.u32 %s429_s1, 4  ;;  %s33_s26 = int_to_ptr.hbm [resolvable:$true] %s32_s26 }
   0x3   :  { %15 = vsyncpa [#allocation4], 0  ;;  %s357_s27 = smov [#allocation5]   ;;  %s21_s8 = sshll.u32 %s428_s0, 4  ;;  %s22_s8 = int_to_ptr.hbm [resolvable:$true] %s21_s8 }
   0x4   :  { %s34_s28 = sshll.u32 %s357_s27, 4  ;;  %s358_s9 = smov [#allocation2]   ;;  %s35_s28 = int_to_ptr.vmem [resolvable:$true] %s34_s28 }
   0x5   :  { %37 = dma.hbm_to_vmem [thread:$0]  %s33_s26, 128, %s35_s28, [#allocation6]  }
   0x6   :  { %s23_s10 = sshll.u32 %s358_s9, 4  ;;  %s44_s13 = sshll.u32 %s431_s3, 4  ;;  %s24_s10 = int_to_ptr.vmem [resolvable:$true] %s23_s10  ;;  %s45_s13 = int_to_ptr.hbm [resolvable:$true] %s44_s13 }
   0x7   :  { %26 = dma.hbm_to_vmem [thread:$0]  %s22_s8, 32, %s24_s10, [#allocation3]  }
   0x8   :  { %s359_s1 = smov [#allocation7]   ;;  %s59_s17 = sshll.u32 %s433_s5, 4  ;;  %s60_s17 = int_to_ptr.hbm [resolvable:$true] %s59_s17 }
   0x9   :  { %s46_s14 = sshll.u32 %s359_s1, 4  ;;  %s360_s18 = smov 128   ;;  %s47_s14 = int_to_ptr.vmem [resolvable:$true] %s46_s14 }
   0xa   :  { %s361_s0 = smov 8   ;;  %s362_s19 = smov [#allocation8]  }
   0xb   :  { %52 = dma.hbm_to_vmem [thread:$0]  %s45_s13, 2048, %s47_s14, [#allocation6], %s360_s18, %s360_s18, %s361_s0  }
   0xc   :  { %s61_s20 = sshll.u32 %s362_s19, 4  ;;  %s62_s20 = int_to_ptr.vmem [resolvable:$true] %s61_s20 }
   0xd   :  { %67 = dma.hbm_to_vmem [thread:$0]  %s60_s17, 2048, %s62_s20, [#allocation9], %s360_s18, %s360_s18, %s361_s0  }
   0xe   :  { %349 = dma.done.wait [#allocation3], 32  }
   0xf   :  { %350 = vsyncadd [#allocation3], 4294967264 }
  0x10   :  { %351 = dma.done.wait [#allocation6], 2176  }
  0x11   :  { %352 = vsyncadd [#allocation6], 4294965120 }
  0x12   :  { %353 = dma.done.wait [#allocation9], 2048  }
  0x13   :  { %354 = vsyncadd [#allocation9], 4294965248  ;;  %vm92_vm0 = vcmask 64512   ;;  %v87_v0 = vld [vmem:[#allocation5] sm:$0xff]  ;;  %v86_v1 = vld [vmem:[#allocation2] sm:$0x3] }
  0x14   :  { %v132_v2 = vld [vmem:[#allocation7 + $0x78] sm:$0xff]  ;;  %111 = vmatpush.msra.mxu0 %v87_v0  ;;  %v131_v3 = vld [vmem:[#allocation7 + $0x70] sm:$0xff]  ;;  %v130_v4 = vld [vmem:[#allocation7 + $0x68] sm:$0xff]  ;;  %s363_s24 = smov [#allocation10]   ;;  %s206_s28 = sshll.u32 %s435_s7, 4  ;;  %s207_s28 = int_to_ptr.hbm [resolvable:$true] %s206_s28 }
  0x15   :  { %137 = vmatpush.msra.mxu1 %v132_v2  ;;  %218 = vmatmul.msk.f32.vlgmr.msra.gmra.mxu0 %vm92_vm0, %v86_v1  ;;  %v129_v5 = vld [vmem:[#allocation7 + $0x60] sm:$0xff]  ;;  %v128_v6 = vld [vmem:[#allocation7 + $0x58] sm:$0xff]  ;;  %v127_v7 = vld [vmem:[#allocation7 + $0x50] sm:$0xff]  ;;  %s204_s25 = sshll.u32 %s363_s24, 4  ;;  %s205_s25 = int_to_ptr.vmem [resolvable:$true] %s204_s25 }
  0x16   :  { %v126_v8 = vld [vmem:[#allocation7 + $0x48] sm:$0xff]  ;;  %v125_v9 = vld [vmem:[#allocation7 + $0x40] sm:$0xff]  ;;  %v124_v10 = vld [vmem:[#allocation7 + $0x38] sm:$0xff] }
  0x17   :  { %138 = vmatpush.msra.mxu1 %v131_v3  ;;  %v123_v11 = vld [vmem:[#allocation7 + $0x30] sm:$0xff]  ;;  %v122_v12 = vld [vmem:[#allocation7 + $0x28] sm:$0xff]  ;;  %v121_v13 = vld [vmem:[#allocation7 + $0x20] sm:$0xff] }
  0x18   :  { %v120_v14 = vld [vmem:[#allocation7 + $0x18] sm:$0xff]  ;;  %v119_v15 = vld [vmem:[#allocation7 + $0x10] sm:$0xff]  ;;  %v118_v16 = vld [vmem:[#allocation7 + $0x8] sm:$0xff] }
  0x19   :  { %139 = vmatpush.msra.mxu1 %v130_v4  ;;  %v117_v17 = vld [vmem:[#allocation7] sm:$0xff]  ;;  %v173_v18 = vld [vmem:[#allocation8 + $0x78] sm:$0xff]  ;;  %v172_v19 = vld [vmem:[#allocation8 + $0x70] sm:$0xff] }
  0x1a   :  { %178 = vmatpush.msra.mxu2 %v173_v18  ;;  %v171_v20 = vld [vmem:[#allocation8 + $0x68] sm:$0xff]  ;;  %v170_v21 = vld [vmem:[#allocation8 + $0x60] sm:$0xff]  ;;  %v169_v22 = vld [vmem:[#allocation8 + $0x58] sm:$0xff] }
  0x1b   :  { %140 = vmatpush.msra.mxu1 %v129_v5  ;;  %v168_v23 = vld [vmem:[#allocation8 + $0x50] sm:$0xff]  ;;  %v167_v24 = vld [vmem:[#allocation8 + $0x48] sm:$0xff]  ;;  %v166_v25 = vld [vmem:[#allocation8 + $0x40] sm:$0xff] }
  0x1c   :  { %179 = vmatpush.msra.mxu2 %v172_v19  ;;  %v165_v26 = vld [vmem:[#allocation8 + $0x38] sm:$0xff]  ;;  %v164_v27 = vld [vmem:[#allocation8 + $0x30] sm:$0xff]  ;;  %v163_v28 = vld [vmem:[#allocation8 + $0x28] sm:$0xff] }
  0x1d   :  { %141 = vmatpush.msra.mxu1 %v128_v6  ;;  %v162_v29 = vld [vmem:[#allocation8 + $0x20] sm:$0xff]  ;;  %v161_v30 = vld [vmem:[#allocation8 + $0x18] sm:$0xff]  ;;  %v226_v31 = vld [vmem:[%s430_s2] ss:$0 sm:$0xff] }
  0x1e   :  { %180 = vmatpush.msra.mxu2 %v171_v20  ;;  %v160_v35 = vld [vmem:[#allocation8 + $0x10] sm:$0xff]  ;;  %v159_v36 = vld [vmem:[#allocation8 + $0x8] sm:$0xff]  ;;  %v158_v37 = vld [vmem:[#allocation8] sm:$0xff] }
  0x1f   :  { %142 = vmatpush.msra.mxu1 %v127_v7  ;;  %v227_v38 = vld [vmem:[%s432_s4] ss:$0 sm:$0xff] }
  0x20   :  { %181 = vmatpush.msra.mxu2 %v170_v21  ;;  %v228_v42 = vld [vmem:[%s434_s6] ss:$0 sm:$0xff] }
  0x21   :  { %143 = vmatpush.msra.mxu1 %v126_v8 }
  0x22   :  { %182 = vmatpush.msra.mxu2 %v169_v22 }
  0x23   :  { %144 = vmatpush.msra.mxu1 %v125_v9 }
  0x24   :  { %183 = vmatpush.msra.mxu2 %v168_v23 }
  0x25   :  { %145 = vmatpush.msra.mxu1 %v124_v10 }
  0x26   :  { %184 = vmatpush.msra.mxu2 %v167_v24 }
  0x27   :  { %146 = vmatpush.msra.mxu1 %v123_v11 }
  0x28   :  { %185 = vmatpush.msra.mxu2 %v166_v25 }
  0x29   :  { %147 = vmatpush.msra.mxu1 %v122_v12 }
  0x2a   :  { %186 = vmatpush.msra.mxu2 %v165_v26 }
  0x2b   :  { %148 = vmatpush.msra.mxu1 %v121_v13 }
  0x2c   :  { %187 = vmatpush.msra.mxu2 %v164_v27 }
  0x2d   :  { %149 = vmatpush.msra.mxu1 %v120_v14 }
  0x2e   :  { %188 = vmatpush.msra.mxu2 %v163_v28 }
  0x2f   :  { %150 = vmatpush.msra.mxu1 %v119_v15 }
  0x30   :  { %189 = vmatpush.msra.mxu2 %v162_v29 }
  0x31   :  { %151 = vmatpush.msra.mxu1 %v118_v16 }
  0x32   :  { %190 = vmatpush.msra.mxu2 %v161_v30 }
  0x33   :  { %152 = vmatpush.msra.mxu1 %v117_v17 }
  0x34   :  { %191 = vmatpush.msra.mxu2 %v160_v35 }
  0x36   :  { %192 = vmatpush.msra.mxu2 %v159_v36 }
  0x38   :  { %193 = vmatpush.msra.mxu2 %v158_v37 }
  0x92   :  { %v113_v32 = vpop.f32.mrf.mxu0 }
  0x93   :  { %v114_v33 = vadd.f32 %v226_v31, %v113_v32 }
  0x95   :  { %v116_v34 = vmax.f32 %v114_v33, 0.0 }
  0x97   :  { %153 = vmatmul.f32.vlgmr.msra.gmra.mxu1 %v116_v34 }
 0x114   :  { %v154_v39 = vpop.f32.mrf.mxu1 }
 0x115   :  { %v155_v40 = vadd.f32 %v227_v38, %v154_v39 }
 0x117   :  { %v157_v41 = vmax.f32 %v155_v40, 0.0 }
 0x119   :  { %194 = vmatmul.f32.vlgmr.msra.gmra.mxu2 %v157_v41 }
 0x19c   :  { %v195_v43 = vpop.f32.mrf.mxu2 }
 0x19d   :  { %v196_v44 = vadd.f32 %v228_v42, %v195_v43 }
 0x19f   :  { %198 = vst [vmem:[#allocation10] sm:$0x3] %v196_v44 }
 0x1a0   :  { %209 = dma.vmem_to_hbm [thread:$0]  %s205_s25, 32, %s207_s28, [#allocation4]  }
 0x1a1   :  { %355 = dma.done.wait [#allocation4], 32  }
 0x1a2   :  { %356 = vsyncadd [#allocation4], 4294967264 }
 0x1a3   :  { %214 = vsyncpa [#allocation3], 1 }
 0x1a4   :  { %215 = vsyncpa [#allocation6], 1 }
 0x1a5   :  { %216 = vsyncpa [#allocation9], 1 }
 0x1a6   :  { %217 = vsyncpa [#allocation4], 1 }

</bundles_post_ra>
